<compile_context>
chip_gen: v6e
topology: v6e:2x2x1
jax: 0.10.0
libtpu: 0.0.40
codegen_flags: <defaults>
</compile_context>

<pallas_src>
import math
import jax
import jax.numpy as jnp
from jax.experimental import pallas as pl
from jax.experimental.pallas import tpu as pltpu

HEADS = 4
D_MODEL = 32
D_K = D_MODEL // HEADS
BATCH = 2
SEQ = 8


# ---------------- fused forward kernel (one batch element per grid step) ----------------
def _mha_fused_kernel(xq_ref, xk_ref, xv_ref, w_qkv_ref, b_qkv_ref,
                      w_out_ref, b_out_ref, sel_ref, selt_ref,
                      ebk_ref, ebv_ref, keep_ref, o_ref):
    """MultiHeadAttention forward for one batch slice.

    xq/xk/xv: (1, S, d_model) activations
    w_qkv:    (3*d_model, 3*d_model) block-diagonal packed [q|k|v] weights
              (q block pre-scaled by 1/sqrt(d_k))
    b_qkv:    (1, 3*d_model) packed biases (q bias pre-scaled)
    w_out:    (d_model, d_model) pre-transposed output-projection weight
    b_out:    (1, d_model)
    sel:      (d_model, HEADS) 0/1 head-selection matrix
    selt:     (HEADS, d_model) its transpose
    ebk/ebv:  (1, S_k, S_q, d_model) edge biases in native layout
              (element [0, j, i, :] biases key/value j for query i)
    keep:     (1, 1, S_q, 1) float; 0.0 blanks the whole query row (torch
              masked_fill semantics after softmax), 1.0 keeps it
    o_ref:    (1, S, d_model) output (lane-dense, concat-head order)
    """
    b, s, dm = xq_ref.shape          # b == 1 per grid step
    nh = sel_ref.shape[1]

    xq = xq_ref[...].reshape(b * s, dm)
    xk = xk_ref[...].reshape(b * s, dm)
    xv = xv_ref[...].reshape(b * s, dm)

    # ---- fused Q/K/V projection: one MXU matmul on [xq|xk|xv] (b*s, 3*dm) ----
    x_cat = jnp.concatenate([xq, xk, xv], axis=-1)
    qkv = jnp.dot(x_cat, w_qkv_ref[...],
                  preferred_element_type=jnp.float32) + b_qkv_ref[...]
    q3 = qkv[:, 0 * dm:1 * dm].reshape(b, s, dm)   # pre-scaled by 1/sqrt(d_k)
    k3 = qkv[:, 1 * dm:2 * dm].reshape(b, s, dm)
    v3 = qkv[:, 2 * dm:3 * dm].reshape(b, s, dm)

    sel = sel_ref[...]               # (dm, nh)
    sel_t = selt_ref[...]            # (nh, dm)

    # ---- scores[b,h,i,j] = q · (k + edge_bias_k), as one MXU contraction ----
    kb = k3[:, :, None, :] + ebk_ref[...]          # (b, j, i, c), lane-dense
    t = kb * q3[:, None, :, :]                     # (b, j, i, c)
    s_raw = jnp.dot(t.reshape(b * s * s, dm), sel,
                    preferred_element_type=jnp.float32).reshape(b, s, s, nh)
    # s_raw[b, j, i, h] == scores[b, h, i, j] (already scaled)

    # torch row-masking: multiply masked query rows by 0 -> constant row ->
    # softmax below gives the same uniform 1/S as masked_fill(-1e9).
    s_raw = s_raw * keep_ref[...]

    # ---- softmax over the key axis j (axis=1 in this layout) ----
    m = jnp.max(s_raw, axis=1, keepdims=True)
    e = jnp.exp(s_raw - m)
    denom = jnp.sum(e, axis=1, keepdims=True)
    p = e * pl.reciprocal(denom, approx=True)      # (b, j, i, h)
    # TODO(synk): nn.Dropout on the attention probs is eval-mode identity here.

    # ---- out: broadcast each head's prob over its d_k lanes, contract over j ----
    p_exp = jnp.dot(p.reshape(b * s * s, nh), sel_t,
                    preferred_element_type=jnp.float32).reshape(b, s, s, dm)
    vb = v3[:, :, None, :] + ebv_ref[...]          # (b, j, i, c)
    ctx = jnp.sum(p_exp * vb, axis=1)              # (b, i, c) == concat-head layout

    # ---- output projection, written lane-dense in final layout ----
    out = jnp.dot(ctx.reshape(b * s, dm), w_out_ref[...],
                  preferred_element_type=jnp.float32) + b_out_ref[...]
    o_ref[...] = out.reshape(b, s, dm).astype(o_ref.dtype)


# ---------------- parameters ----------------
def init_params(key, d_model):
    ks = jax.random.split(key, 8)
    bound = 1.0 / math.sqrt(d_model)
    u = lambda kk, shp: jax.random.uniform(kk, shp, jnp.float32, -bound, bound)
    return {
        "wq": u(ks[0], (d_model, d_model)), "bq": u(ks[1], (d_model,)),
        "wk": u(ks[2], (d_model, d_model)), "bk": u(ks[3], (d_model,)),
        "wv": u(ks[4], (d_model, d_model)), "bv": u(ks[5], (d_model,)),
        "wo": u(ks[6], (d_model, d_model)), "bo": u(ks[7], (d_model,)),
    }


def pack_params(params):
    """One-time packing (NOT per forward call):
    - block-diagonal pre-transposed QKV weight with 1/sqrt(d_k) folded into q,
    - packed QKV bias (q bias pre-scaled),
    - pre-transposed output weight/bias,
    - host-built 0/1 head-selection matrices sel (dm, nh) / sel_t (nh, dm)."""
    dm = params["wq"].shape[0]
    scale = 1.0 / math.sqrt(D_K)
    z = jnp.zeros((dm, dm), jnp.float32)
    w_qkv = jnp.block([
        [params["wq"].T * scale, z, z],
        [z, params["wk"].T, z],
        [z, z, params["wv"].T],
    ])
    b_qkv = jnp.concatenate([params["bq"] * scale, params["bk"], params["bv"]])[None, :]
    w_out = params["wo"].T
    b_out = params["bo"][None, :]
    c = jnp.arange(dm)
    sel = (c[:, None] // D_K == jnp.arange(HEADS)[None, :]).astype(jnp.float32)  # (dm, nh)
    sel_t = sel.T                                                                # (nh, dm)
    return w_qkv, b_qkv, w_out, b_out, sel, sel_t


# ---------------- module forward (one fused pallas_call, batch-parallel grid) ----------------
@jax.jit
def multi_head_attention(w_qkv, b_qkv, w_out, b_out, sel, sel_t,
                         q_in, k_in, v_in, edge_bias_k, edge_bias_v, mask):
    b, s, dm = q_in.shape
    nh = sel.shape[1]
    # multiplicative keep mask: 0.0 blanks the whole query row (see kernel comment)
    keep = (1.0 - mask.astype(jnp.float32)).reshape(b, 1, s, 1)

    def _replicated(shape):
        n = len(shape)
        return pl.BlockSpec(shape, lambda i, n=n: (0,) * n)

    per_batch_3d = pl.BlockSpec((1, s, dm), lambda i: (i, 0, 0))
    per_batch_bias = pl.BlockSpec((1, s, s, dm), lambda i: (i, 0, 0, 0))

    grid_spec = pltpu.PrefetchScalarGridSpec(
        num_scalar_prefetch=0,
        grid=(b,),
        in_specs=[
            per_batch_3d, per_batch_3d, per_batch_3d,            # xq, xk, xv
            _replicated((3 * dm, 3 * dm)),                       # w_qkv
            _replicated((1, 3 * dm)),                            # b_qkv
            _replicated((dm, dm)),                               # w_out
            _replicated((1, dm)),                                # b_out
            _replicated((dm, nh)),                               # sel
            _replicated((nh, dm)),                               # sel_t
            per_batch_bias, per_batch_bias,                      # ebk, ebv
            pl.BlockSpec((1, 1, s, 1), lambda i: (i, 0, 0, 0)),  # keep mask
        ],
        out_specs=pl.BlockSpec((1, s, dm), lambda i: (i, 0, 0)),
    )

    return pl.pallas_call(
        _mha_fused_kernel,
        out_shape=jax.ShapeDtypeStruct((b, s, dm), q_in.dtype),
        grid_spec=grid_spec,
        compiler_params=pltpu.CompilerParams(
            dimension_semantics=("parallel",)),   # 2nd TC on v7x; pipelines DMA elsewhere
    )(q_in, k_in, v_in, w_qkv, b_qkv, w_out, b_out, sel, sel_t,
      edge_bias_k, edge_bias_v, keep)


# ---------------- pure-jnp reference (transcribed from PyTorch) ----------------
def reference_forward(params, q_in, k_in, v_in, ebk, ebv, mask):
    b, s, dm = q_in.shape
    nh, dk = HEADS, D_K
    lin = lambda x, w, bb: x @ w.T + bb
    q = lin(q_in, params["wq"], params["bq"]).reshape(b, s, nh, dk).transpose(0, 2, 1, 3)
    k = lin(k_in, params["wk"], params["bk"]).reshape(b, s, nh, dk).transpose(0, 2, 1, 3)
    v = lin(v_in, params["wv"], params["bv"]).reshape(b, s, nh, dk).transpose(0, 2, 1, 3)
    bkr = jnp.transpose(ebk.reshape(b, s, s, nh, dk), (0, 3, 2, 1, 4))
    bvr = jnp.transpose(ebv.reshape(b, s, s, nh, dk), (0, 3, 2, 1, 4))
    ebK = k[:, :, None, :, :] + bkr
    scores = jnp.einsum("bhid,bhijd->bhij", q, ebK) / math.sqrt(dk)
    m = mask[:, None, :, None]
    scores = jnp.where(m == 1, -1000000000.0, scores)
    scores = jax.nn.softmax(scores, axis=-1)
    ebV = v[:, :, None, :, :] + bvr
    out = jnp.einsum("bhij,bhijd->bhid", scores, ebV)
    concat = out.transpose(0, 2, 1, 3).reshape(b, s, dm)
    return lin(concat, params["wo"], params["bo"])


if __name__ == "__main__":
    key = jax.random.PRNGKey(0)
    kp, kq, kk, kv, kbk, kbv, km = jax.random.split(key, 7)
    params = init_params(kp, D_MODEL)
    # packed / transposed / scaled ONCE, outside the forward
    w_qkv, b_qkv, w_out, b_out, sel, sel_t = pack_params(params)

    q_in = jax.random.normal(kq, (BATCH, SEQ, D_MODEL), jnp.float32)
    k_in = jax.random.normal(kk, (BATCH, SEQ, D_MODEL), jnp.float32)
    v_in = jax.random.normal(kv, (BATCH, SEQ, D_MODEL), jnp.float32)
    edge_bias_k = jax.random.normal(kbk, (BATCH, SEQ, SEQ, D_MODEL), jnp.float32)
    edge_bias_v = jax.random.normal(kbv, (BATCH, SEQ, SEQ, D_MODEL), jnp.float32)
    mask = (jax.random.uniform(km, (BATCH, SEQ)) > 0.7).astype(jnp.int32)

    out = multi_head_attention(w_qkv, b_qkv, w_out, b_out, sel, sel_t,
                               q_in, k_in, v_in, edge_bias_k, edge_bias_v, mask)
    out = jax.block_until_ready(out)

    ref = reference_forward(params, q_in, k_in, v_in,
                            edge_bias_k, edge_bias_v, mask)
    assert out.shape == (BATCH, SEQ, D_MODEL)
    err = float(jnp.max(jnp.abs(out - ref)))
    # tolerance leaves headroom for the approx (EUP) reciprocal in the softmax
    assert jnp.allclose(out, ref, rtol=2e-3, atol=2e-3), err
    print("KERNEL_OK")
</pallas_src>

<mosaic_0001>
module attributes {stable_mosaic.version = 11 : i64} {
  func.func @_mha_fused_kernel(%arg0: i32, %arg1: memref<1x8x32xf32, #tpu.memory_space<vmem>>, %arg2: memref<1x8x32xf32, #tpu.memory_space<vmem>>, %arg3: memref<1x8x32xf32, #tpu.memory_space<vmem>>, %arg4: memref<96x96xf32, #tpu.memory_space<vmem>>, %arg5: memref<1x96xf32, #tpu.memory_space<vmem>>, %arg6: memref<32x32xf32, #tpu.memory_space<vmem>>, %arg7: memref<1x32xf32, #tpu.memory_space<vmem>>, %arg8: memref<32x4xf32, #tpu.memory_space<vmem>>, %arg9: memref<4x32xf32, #tpu.memory_space<vmem>>, %arg10: memref<1x8x8x32xf32, #tpu.memory_space<vmem>>, %arg11: memref<1x8x8x32xf32, #tpu.memory_space<vmem>>, %arg12: memref<1x1x8x1xf32, #tpu.memory_space<vmem>>, %arg13: memref<1x8x32xf32, #tpu.memory_space<vmem>>) attributes {dimension_semantics = [#tpu.dimension_semantics<parallel>], iteration_bounds = array<i64: 2>, scalar_prefetch = 0 : i64, scratch_operands = 0 : i64, tpu.core_type = #tpu.core_type<tc>, window_params = [{transform_indices = @transform_0, window_bounds = array<i64: 1, 8, 32>}, {transform_indices = @transform_1, window_bounds = array<i64: 1, 8, 32>}, {transform_indices = @transform_2, window_bounds = array<i64: 1, 8, 32>}, {pipeline_mode = #tpu.pipeline_mode<synchronous>, transform_indices = @transform_3, window_bounds = array<i64: 96, 96>}, {pipeline_mode = #tpu.pipeline_mode<synchronous>, transform_indices = @transform_4, window_bounds = array<i64: 1, 96>}, {pipeline_mode = #tpu.pipeline_mode<synchronous>, transform_indices = @transform_5, window_bounds = array<i64: 32, 32>}, {pipeline_mode = #tpu.pipeline_mode<synchronous>, transform_indices = @transform_6, window_bounds = array<i64: 1, 32>}, {pipeline_mode = #tpu.pipeline_mode<synchronous>, transform_indices = @transform_7, window_bounds = array<i64: 32, 4>}, {pipeline_mode = #tpu.pipeline_mode<synchronous>, transform_indices = @transform_8, window_bounds = array<i64: 4, 32>}, {transform_indices = @transform_9, window_bounds = array<i64: 1, 8, 8, 32>}, {transform_indices = @transform_10, window_bounds = array<i64: 1, 8, 8, 32>}, {transform_indices = @transform_11, window_bounds = array<i64: 1, 1, 8, 1>}, {transform_indices = @transform_12, window_bounds = array<i64: 1, 8, 32>}]} {
    %c0 = arith.constant 0 : index
    %c0_0 = arith.constant 0 : index
    %c0_1 = arith.constant 0 : index
    %0 = vector.load %arg1[%c0, %c0_0, %c0_1] : memref<1x8x32xf32, #tpu.memory_space<vmem>>, vector<1x8x32xf32>
    %1 = vector.shape_cast %0 : vector<1x8x32xf32> to vector<8x32xf32>
    %c0_2 = arith.constant 0 : index
    %c0_3 = arith.constant 0 : index
    %c0_4 = arith.constant 0 : index
    %2 = vector.load %arg2[%c0_2, %c0_3, %c0_4] : memref<1x8x32xf32, #tpu.memory_space<vmem>>, vector<1x8x32xf32>
    %3 = vector.shape_cast %2 : vector<1x8x32xf32> to vector<8x32xf32>
    %c0_5 = arith.constant 0 : index
    %c0_6 = arith.constant 0 : index
    %c0_7 = arith.constant 0 : index
    %4 = vector.load %arg3[%c0_5, %c0_6, %c0_7] : memref<1x8x32xf32, #tpu.memory_space<vmem>>, vector<1x8x32xf32>
    %5 = vector.shape_cast %4 : vector<1x8x32xf32> to vector<8x32xf32>
    %6 = tpu.concatenate %1, %3, %5 in 1 : vector<8x32xf32>, vector<8x32xf32>, vector<8x32xf32> -> vector<8x96xf32>
    %c0_8 = arith.constant 0 : index
    %c0_9 = arith.constant 0 : index
    %7 = vector.load %arg4[%c0_8, %c0_9] : memref<96x96xf32, #tpu.memory_space<vmem>>, vector<96x96xf32>
    %cst = arith.constant dense<0.000000e+00> : vector<8x96xf32>
    %8 = tpu.matmul %6, %7, %cst {dimension_numbers = #tpu.dot_dimension_numbers<[1], [0], [0], [1], [0, 0, 1, 1], [], []>} : vector<8x96xf32>, vector<96x96xf32>, vector<8x96xf32> -> vector<8x96xf32>
    %c0_10 = arith.constant 0 : index
    %c0_11 = arith.constant 0 : index
    %9 = vector.load %arg5[%c0_10, %c0_11] : memref<1x96xf32, #tpu.memory_space<vmem>>, vector<1x96xf32>
    %10 = vector.broadcast %9 : vector<1x96xf32> to vector<8x96xf32>
    %11 = arith.addf %8, %10 : vector<8x96xf32>
    %12 = vector.extract_strided_slice %11 {offsets = [0, 0], sizes = [8, 32], strides = [1, 1]} : vector<8x96xf32> to vector<8x32xf32>
    %13 = vector.shape_cast %12 : vector<8x32xf32> to vector<1x8x32xf32>
    %14 = vector.extract_strided_slice %11 {offsets = [0, 32], sizes = [8, 32], strides = [1, 1]} : vector<8x96xf32> to vector<8x32xf32>
    %15 = vector.shape_cast %14 : vector<8x32xf32> to vector<1x8x32xf32>
    %16 = vector.extract_strided_slice %11 {offsets = [0, 64], sizes = [8, 32], strides = [1, 1]} : vector<8x96xf32> to vector<8x32xf32>
    %17 = vector.shape_cast %16 : vector<8x32xf32> to vector<1x8x32xf32>
    %c0_12 = arith.constant 0 : index
    %c0_13 = arith.constant 0 : index
    %18 = vector.load %arg8[%c0_12, %c0_13] : memref<32x4xf32, #tpu.memory_space<vmem>>, vector<32x4xf32>
    %c0_14 = arith.constant 0 : index
    %c0_15 = arith.constant 0 : index
    %19 = vector.load %arg9[%c0_14, %c0_15] : memref<4x32xf32, #tpu.memory_space<vmem>>, vector<4x32xf32>
    %20 = vector.shape_cast %15 : vector<1x8x32xf32> to vector<1x8x1x32xf32>
    %c0_16 = arith.constant 0 : index
    %c0_17 = arith.constant 0 : index
    %c0_18 = arith.constant 0 : index
    %c0_19 = arith.constant 0 : index
    %21 = vector.load %arg10[%c0_16, %c0_17, %c0_18, %c0_19] : memref<1x8x8x32xf32, #tpu.memory_space<vmem>>, vector<1x8x8x32xf32>
    %22 = vector.broadcast %20 : vector<1x8x1x32xf32> to vector<1x8x8x32xf32>
    %23 = arith.addf %22, %21 : vector<1x8x8x32xf32>
    %24 = vector.shape_cast %13 : vector<1x8x32xf32> to vector<1x1x8x32xf32>
    %25 = vector.broadcast %24 : vector<1x1x8x32xf32> to vector<1x8x8x32xf32>
    %26 = arith.mulf %23, %25 : vector<1x8x8x32xf32>
    %27 = vector.shape_cast %26 : vector<1x8x8x32xf32> to vector<64x32xf32>
    %cst_20 = arith.constant dense<0.000000e+00> : vector<64x4xf32>
    %28 = tpu.matmul %27, %18, %cst_20 {dimension_numbers = #tpu.dot_dimension_numbers<[1], [0], [0], [1], [0, 0, 1, 1], [], []>} : vector<64x32xf32>, vector<32x4xf32>, vector<64x4xf32> -> vector<64x4xf32>
    %29 = vector.shape_cast %28 : vector<64x4xf32> to vector<1x8x8x4xf32>
    %c0_21 = arith.constant 0 : index
    %c0_22 = arith.constant 0 : index
    %c0_23 = arith.constant 0 : index
    %c0_24 = arith.constant 0 : index
    %30 = vector.load %arg12[%c0_21, %c0_22, %c0_23, %c0_24] : memref<1x1x8x1xf32, #tpu.memory_space<vmem>>, vector<1x1x8x1xf32>
    %31 = vector.broadcast %30 : vector<1x1x8x1xf32> to vector<1x8x8x4xf32>
    %32 = arith.mulf %29, %31 : vector<1x8x8x4xf32>
    %cst_25 = arith.constant dense<0xFF800000> : vector<1x8x4xf32>
    %33 = vector.multi_reduction <maximumf>, %32, %cst_25 [1] : vector<1x8x8x4xf32> to vector<1x8x4xf32>
    %34 = vector.shape_cast %33 : vector<1x8x4xf32> to vector<1x1x8x4xf32>
    %35 = vector.broadcast %34 : vector<1x1x8x4xf32> to vector<1x8x8x4xf32>
    %36 = arith.subf %32, %35 : vector<1x8x8x4xf32>
    %37 = math.exp %36 : vector<1x8x8x4xf32>
    %cst_26 = arith.constant dense<0.000000e+00> : vector<1x8x4xf32>
    %38 = vector.multi_reduction <add>, %37, %cst_26 [1] : vector<1x8x8x4xf32> to vector<1x8x4xf32>
    %39 = vector.shape_cast %38 : vector<1x8x4xf32> to vector<1x1x8x4xf32>
    %40 = tpu.reciprocal %39 {approx = true} : vector<1x1x8x4xf32> -> vector<1x1x8x4xf32>
    %41 = vector.broadcast %40 : vector<1x1x8x4xf32> to vector<1x8x8x4xf32>
    %42 = arith.mulf %37, %41 : vector<1x8x8x4xf32>
    %43 = vector.shape_cast %42 : vector<1x8x8x4xf32> to vector<64x4xf32>
    %cst_27 = arith.constant dense<0.000000e+00> : vector<64x32xf32>
    %44 = tpu.matmul %43, %19, %cst_27 {dimension_numbers = #tpu.dot_dimension_numbers<[1], [0], [0], [1], [0, 0, 1, 1], [], []>} : vector<64x4xf32>, vector<4x32xf32>, vector<64x32xf32> -> vector<64x32xf32>
    %45 = vector.shape_cast %44 : vector<64x32xf32> to vector<1x8x8x32xf32>
    %46 = vector.shape_cast %17 : vector<1x8x32xf32> to vector<1x8x1x32xf32>
    %c0_28 = arith.constant 0 : index
    %c0_29 = arith.constant 0 : index
    %c0_30 = arith.constant 0 : index
    %c0_31 = arith.constant 0 : index
    %47 = vector.load %arg11[%c0_28, %c0_29, %c0_30, %c0_31] : memref<1x8x8x32xf32, #tpu.memory_space<vmem>>, vector<1x8x8x32xf32>
    %48 = vector.broadcast %46 : vector<1x8x1x32xf32> to vector<1x8x8x32xf32>
    %49 = arith.addf %48, %47 : vector<1x8x8x32xf32>
    %50 = arith.mulf %45, %49 : vector<1x8x8x32xf32>
    %cst_32 = arith.constant dense<0.000000e+00> : vector<1x8x32xf32>
    %51 = vector.multi_reduction <add>, %50, %cst_32 [1] : vector<1x8x8x32xf32> to vector<1x8x32xf32>
    %52 = vector.shape_cast %51 : vector<1x8x32xf32> to vector<8x32xf32>
    %c0_33 = arith.constant 0 : index
    %c0_34 = arith.constant 0 : index
    %53 = vector.load %arg6[%c0_33, %c0_34] : memref<32x32xf32, #tpu.memory_space<vmem>>, vector<32x32xf32>
    %cst_35 = arith.constant dense<0.000000e+00> : vector<8x32xf32>
    %54 = tpu.matmul %52, %53, %cst_35 {dimension_numbers = #tpu.dot_dimension_numbers<[1], [0], [0], [1], [0, 0, 1, 1], [], []>} : vector<8x32xf32>, vector<32x32xf32>, vector<8x32xf32> -> vector<8x32xf32>
    %c0_36 = arith.constant 0 : index
    %c0_37 = arith.constant 0 : index
    %55 = vector.load %arg7[%c0_36, %c0_37] : memref<1x32xf32, #tpu.memory_space<vmem>>, vector<1x32xf32>
    %56 = vector.broadcast %55 : vector<1x32xf32> to vector<8x32xf32>
    %57 = arith.addf %54, %56 : vector<8x32xf32>
    %58 = vector.shape_cast %57 : vector<8x32xf32> to vector<1x8x32xf32>
    %c0_38 = arith.constant 0 : index
    %c0_39 = arith.constant 0 : index
    %c0_40 = arith.constant 0 : index
    %59 = vector.load %arg13[%c0_38, %c0_39, %c0_40] : memref<1x8x32xf32, #tpu.memory_space<vmem>>, vector<1x8x32xf32>
    tpu.vector_store %arg13[%c0_38, %c0_39, %c0_40], %58 {strides = array<i32>} : memref<1x8x32xf32, #tpu.memory_space<vmem>>, vector<1x8x32xf32>,
    return
  }
  func.func @transform_0(%arg0: i32) -> (i32, i32, i32) {
    %c0_i32 = arith.constant 0 : i32
    %c0_i32_0 = arith.constant 0 : i32
    %c0_i32_1 = arith.constant 0 : i32
    return %arg0, %c0_i32, %c0_i32_0 : i32, i32, i32
  }
  func.func @transform_1(%arg0: i32) -> (i32, i32, i32) {
    %c0_i32 = arith.constant 0 : i32
    %c0_i32_0 = arith.constant 0 : i32
    %c0_i32_1 = arith.constant 0 : i32
    return %arg0, %c0_i32, %c0_i32_0 : i32, i32, i32
  }
  func.func @transform_2(%arg0: i32) -> (i32, i32, i32) {
    %c0_i32 = arith.constant 0 : i32
    %c0_i32_0 = arith.constant 0 : i32
    %c0_i32_1 = arith.constant 0 : i32
    return %arg0, %c0_i32, %c0_i32_0 : i32, i32, i32
  }
  func.func @transform_3(%arg0: i32) -> (i32, i32) {
    %c0_i32 = arith.constant 0 : i32
    %c0_i32_0 = arith.constant 0 : i32
    %c0_i32_1 = arith.constant 0 : i32
    return %c0_i32, %c0_i32_0 : i32, i32
  }
  func.func @transform_4(%arg0: i32) -> (i32, i32) {
    %c0_i32 = arith.constant 0 : i32
    %c0_i32_0 = arith.constant 0 : i32
    %c0_i32_1 = arith.constant 0 : i32
    return %c0_i32, %c0_i32_0 : i32, i32
  }
  func.func @transform_5(%arg0: i32) -> (i32, i32) {
    %c0_i32 = arith.constant 0 : i32
    %c0_i32_0 = arith.constant 0 : i32
    %c0_i32_1 = arith.constant 0 : i32
    return %c0_i32, %c0_i32_0 : i32, i32
  }
  func.func @transform_6(%arg0: i32) -> (i32, i32) {
    %c0_i32 = arith.constant 0 : i32
    %c0_i32_0 = arith.constant 0 : i32
    %c0_i32_1 = arith.constant 0 : i32
    return %c0_i32, %c0_i32_0 : i32, i32
  }
  func.func @transform_7(%arg0: i32) -> (i32, i32) {
    %c0_i32 = arith.constant 0 : i32
    %c0_i32_0 = arith.constant 0 : i32
    %c0_i32_1 = arith.constant 0 : i32
    return %c0_i32, %c0_i32_0 : i32, i32
  }
  func.func @transform_8(%arg0: i32) -> (i32, i32) {
    %c0_i32 = arith.constant 0 : i32
    %c0_i32_0 = arith.constant 0 : i32
    %c0_i32_1 = arith.constant 0 : i32
    return %c0_i32, %c0_i32_0 : i32, i32
  }
  func.func @transform_9(%arg0: i32) -> (i32, i32, i32, i32) {
    %c0_i32 = arith.constant 0 : i32
    %c0_i32_0 = arith.constant 0 : i32
    %c0_i32_1 = arith.constant 0 : i32
    %c0_i32_2 = arith.constant 0 : i32
    return %arg0, %c0_i32, %c0_i32_0, %c0_i32_1 : i32, i32, i32, i32
  }
  func.func @transform_10(%arg0: i32) -> (i32, i32, i32, i32) {
    %c0_i32 = arith.constant 0 : i32
    %c0_i32_0 = arith.constant 0 : i32
    %c0_i32_1 = arith.constant 0 : i32
    %c0_i32_2 = arith.constant 0 : i32
    return %arg0, %c0_i32, %c0_i32_0, %c0_i32_1 : i32, i32, i32, i32
  }
  func.func @transform_11(%arg0: i32) -> (i32, i32, i32, i32) {
    %c0_i32 = arith.constant 0 : i32
    %c0_i32_0 = arith.constant 0 : i32
    %c0_i32_1 = arith.constant 0 : i32
    %c0_i32_2 = arith.constant 0 : i32
    return %arg0, %c0_i32, %c0_i32_0, %c0_i32_1 : i32, i32, i32, i32
  }
  func.func @transform_12(%arg0: i32) -> (i32, i32, i32) {
    %c0_i32 = arith.constant 0 : i32
    %c0_i32_0 = arith.constant 0 : i32
    %c0_i32_1 = arith.constant 0 : i32
    return %arg0, %c0_i32, %c0_i32_0 : i32, i32, i32
  }
}

</mosaic_0001>

<bundles_post_ra>
// kernel: multi_head_attention.1
= control target key start
LH: loop header
LB: loop body
LE: loop exit
PB: predicated region body
PF: predicated region fallthrough
CT: control target
= control target key end

     0   :  { %s2665_s0 = inlined_call_operand.vmem [shape: f32[2,8,32], index: 0, kind: input, shape index: {}]   ;;  %s2666_s1 = inlined_call_operand.vmem [shape: f32[2,8,32], index: 1, kind: input, shape index: {}]   ;;  %s2667_s2 = inlined_call_operand.hbm [shape: f32[2,8,32], index: 2, kind: input, shape index: {}]   ;;  %s2668_s3 = inlined_call_operand.hbm [shape: f32[96,96], index: 3, kind: input, shape index: {}]   ;;  %s2669_s4 = inlined_call_operand.vmem [shape: f32[1,96], index: 4, kind: input, shape index: {}]   ;;  %s2670_s5 = inlined_call_operand.vmem [shape: f32[32,32], index: 5, kind: input, shape index: {}]   ;;  %s2671_s6 = inlined_call_operand.hbm [shape: f32[1,32], index: 6, kind: input, shape index: {}]   ;;  %s2672_s7 = inlined_call_operand.vmem [shape: f32[32,4], index: 7, kind: input, shape index: {}]   ;;  %s2673_s8 = inlined_call_operand.hbm [shape: f32[4,32], index: 8, kind: input, shape index: {}]   ;;  %s2674_s9 = inlined_call_operand.hbm [shape: f32[2,8,8,32], index: 9, kind: input, shape index: {}]   ;;  %s2675_s10 = inlined_call_operand.hbm [shape: f32[2,8,8,32], index: 10, kind: input, shape index: {}]   ;;  %s2676_s11 = inlined_call_operand.vmem [shape: f32[2,1,8,1], index: 11, kind: input, shape index: {}]   ;;  %s2677_s12 = inlined_call_operand.hbm [shape: f32[2,8,32], index: 12, kind: output, shape index: {}]  }
   0x1   :  { %2694 = sst [smem:[#allocation24_spill]] %s2667_s2 }
   0x2   :  { %2695 = sst [smem:[#allocation25_spill]] %s2670_s5 }
   0x3   :  { %2696 = sst [smem:[#allocation26_spill]] %s2676_s11 }
   0x4   :  { %2697 = sst [smem:[#allocation27_spill]] %s2677_s12 }
   0x5   :  { %17 = vsyncpa [#allocation3], 0 }
   0x6   :  { %19 = vsyncpa [#allocation3 + $0x1], 0 }
   0x7   :  { %20 = vsyncpa [#allocation6], 0 }
   0x8   :  { %21 = vsyncpa [#allocation9], 0 }
   0x9   :  { %22 = vsyncpa [#allocation4], 0 }
   0xa   :  { %24 = vsyncpa [#allocation4 + $0x1], 0  ;;  %s2189_s21 = smov 0   ;;  %s2191_s22 = smov 0  }
   0xb   :  { %s2193_s23 = smov 0   ;;  %s2195_s24 = smov 0  }
   0xc LB: > { %2698 = sst [smem:[#allocation18_spill]] %s2094_s21  ;;  %s2210_s25 = sadd.s32 1, %s2106_s24   ;;  %s2106_s24 = sphi %s2195_s24, %s2730_s24   ;;  %s2102_s23 = sphi %s2193_s23, %s2732_s23   ;;  %s2098_s22 = sphi %s2191_s22, %s2734_s22   ;;  %s2094_s21 = sphi %s2189_s21, %s2733_s21  }
   0xd   : > { %2699 = sst [smem:[#allocation19_spill]] %s2102_s23  ;;  %s89_s26 = sadd.s32 1, %s2102_s23 }
   0xe   : > { %2700 = sst [smem:[#allocation20_spill]] %s2210_s25  ;;  %s86_s27 = ssub.s32 %s2106_s24, %s2210_s25 }
   0xf   : > { %p2682_p0 = scmp.ne.s32.totalorder %s2102_s23, %s2098_s22  ;;  %p87_p1 = scmp.eq.s32.totalorder %s86_s27, 0 }
  0x10   : > { %p97_p2 = scmp.eq.s32.totalorder %s2106_s24, 0  ;;  %p1799_p4 = scmp.lt.s32.totalorder %s2106_s24, 2 }
  0x11   : > { %s2221_s28 = scalar_select %p87_p1, %s2102_s23, %s89_s26  }
  0x12   : > { %p98_p5 = por %p97_p2, %p2682_p0  ;;  %s414_s29 = sand.u32 1, %s2106_s24  }
  0x13   : > { %2701 = sst [smem:[#allocation21_spill]] %s2221_s28  ;;  %s416_s30 = sand.u32 1, %s2102_s23  }
  0x14   : > { %s1595_s13 = sshll.u32 %s416_s30, 3  ;;  %s1596_s14 = sshll.u32 %s2106_s24, 7 }
  0x15   : > { %s2702_s2 = sld [smem:[#allocation24_spill]]  ;;  %s418_s18 = scalar_lea.vmem [#allocation2], %s1595_s13 }
  0x16   : > { %s425_s19 = sshll.u32 %s418_s18, 4  ;;  %p2234_p6 = pnand %p1799_p4, %p98_p5  ;;  %s426_s19 = int_to_ptr.vmem [resolvable:$true] %s425_s19 }
  0x17   : > { %s2238_s26 = sshll.u32 %s416_s30, 6  ;;  %s2240_s27 = scalar_lea.sflag [#allocation3], %s414_s29 }
  0x18   : > { %p2246_p8 = pneg %p2234_p6 }
  0x1b   : > { %s2232_s17 = scalar_lea.hbm %s2702_s2, %s1596_s14  ;;  %s1873_s16 = scalar_lea.hbm %s2702_s2, 256 }
  0x1c   : > { %s1868_s28 = scalar_lea.hbm %s2232_s17, 128  ;;  %p1874_p11 = scmp.lt.s32.totalorder %s2232_s17, %s2702_s2 }
  0x1d   : > { %p1869_p7 = scmp.ne.s32.totalorder %s2232_s17, %s1868_s28  ;;  %p1875_p12 = scmp.lt.s32.totalorder %s1873_s16, %s1868_s28 }
  0x1f   : > { %p1871_p9 = pnand %p2246_p8, %p1869_p7  ;;  %p1876_p13 = por %p1875_p12, %p1874_p11 }
  0x21   : > { %p1872_p10 = pneg %p1871_p9 }
  0x23   : > { %p1877_p1 = pnand %p1876_p13, %p1872_p10 }
  0x25   : > { %1880 = shalt.err (!%p1877_p1)
}
  0x26   : > { %s1881_s29 = scalar_lea.vmem %s426_s19, 128  ;;  %s2108_s25 = smov [#allocation2]  }
  0x27   : > { %p1882_p2 = scmp.ne.s32.totalorder %s426_s19, %s1881_s29  ;;  %s1886_s12 = sshll.u32 %s2108_s25, 4  ;;  %s1887_s12 = int_to_ptr.vmem [resolvable:$false] %s1886_s12 }
  0x28   : > { %s1888_s5 = scalar_lea.vmem %s1887_s12, 256  ;;  %p1889_p7 = scmp.lt.s32.totalorder %s426_s19, %s1887_s12 }
  0x29   : > { %p1884_p4 = pnand %p1882_p2, %p2246_p8  ;;  %p1890_p9 = scmp.lt.s32.totalorder %s1888_s5, %s1881_s29 }
  0x2b   : > { %p1885_p5 = pneg %p1884_p4  ;;  %p1891_p3 = por %p1890_p9, %p1889_p7 }
  0x2d   : > { %p1892_p0 = pnand %p1891_p3, %p1885_p5 }
  0x2f   : > { %1895 = shalt.err (!%p1892_p0)
}
  0x30   : > { %1785 = dma.hbm_to_vmem [thread:$0]  (!%p2234_p6), %s2232_s17, 128, %s426_s19, %s2240_s27  }
  0x31   : > { %s436_s25 = scalar_lea.vmem [#allocation10], %s2238_s26  ;;  %s457_s12 = scalar_lea.vmem [#allocation11], %s2238_s26 }
  0x32   : > { %s443_s5 = sshll.u32 %s436_s25, 4  ;;  %s464_s28 = sshll.u32 %s457_s12, 4  ;;  %s2266_s5 = int_to_ptr.vmem [resolvable:$true] %s443_s5  ;;  %s2269_s28 = int_to_ptr.vmem [resolvable:$true] %s464_s28 }
  0x33   : > { %s2272_s13 = sadd.s32 4294967295, %s2106_s24   ;;  %s1589_s15 = sadd.s32 4294967294, %s2106_s24  }
  0x34   : > { %p102_p0 = scmp.ne.s32.totalorder %s2098_s22, %s2094_s21  ;;  %p2688_p3 = scmp.eq.s32.totalorder %s2272_s13, 0 }
  0x35   : > { %p330_p10 = scmp.eq.s32.totalorder %s2272_s13, 1  ;;  %p336_p11 = scmp.eq.s32.totalorder %s1589_s15, 1 }
  0x36   : > { %p1590_p12 = scmp.ge.s32.totalorder %s2106_s24, 1  ;;  %p2282_p13 = por %p2688_p3, %p102_p0 }
  0x37   : > { %p2706_p1 = scmp.ne.s32.totalorder %s2102_s23, %s2098_s22  ;;  %p2293_p4 = por %p336_p11, %p102_p0 }
  0x38   : > { %s2705_s17 = scalar_select %p2282_p13, 1, 0 }
  0x39   : > { %p2289_p2 = por %p330_p10, %p2706_p1  ;;  %p343_p5 = scmp.lt.s32.totalorder %s2106_s24, 3 }
  0x3a   : > { %s2709_s26 = scalar_select %p2293_p4, 1, 0 }
  0x3b   : > { %s2707_s19 = scalar_select %p2289_p2, 1, 0 }
  0x3c   : > { %2710 = sst [smem:[#allocation23_spill]] %s2709_s26  ;;  %p2298_p7 = pnand %p1590_p12, %p343_p5 }
  0x3d   : > { %2708 = sst [smem:[#allocation22_spill]] %s2707_s19  ;;  %s2109_s18 = smov [#allocation5]  }
  0x3e   : > { %s2711_s16 = scalar_select %p2298_p7, 1, 0 }
  0x3f   : > { %s355_s30 = sshll.u32 %s2109_s18, 4  ;;  %p1772_p9 = pneg %p2298_p7  ;;  %s2302_s30 = int_to_ptr.vmem [resolvable:$true] %s355_s30 }
  0x40   : > { %s1639_s29 = sshll.u32 %s2106_s24, 10  ;;  %s1901_s21 = scalar_lea.hbm %s2674_s9, 2048 }
  0x41   : > { %p2309_p10 = pnand %p1772_p9, %p2688_p3  ;;  %s2318_s2 = scalar_lea.hbm %s2674_s9, %s1639_s29 }
  0x42   : > { %s1896_s18 = scalar_lea.hbm %s2318_s2, 1024  ;;  %p1902_p1 = scmp.lt.s32.totalorder %s2318_s2, %s2674_s9 }
  0x43   : > { %s2712_s25 = scalar_select %p2309_p10, 1, 0 }
  0x44   : > { %p1897_p0 = scmp.ne.s32.totalorder %s2318_s2, %s1896_s18  ;;  %p1903_p5 = scmp.lt.s32.totalorder %s1901_s21, %s1896_s18 }
  0x46   : > { %p1899_p11 = pnand %p1897_p0, %p2246_p8  ;;  %p1904_p9 = por %p1903_p5, %p1902_p1 }
  0x48   : > { %p1900_p12 = pneg %p1899_p11 }
  0x4a   : > { %p1905_p3 = pnand %p1904_p9, %p1900_p12 }
  0x4c   : > { %1908 = shalt.err (!%p1905_p3)
}
  0x4d   : > { %s1909_s12 = scalar_lea.vmem %s2266_s5, 1024  ;;  %s2110_s15 = smov [#allocation10]  }
  0x4e   : > { %p1910_p4 = scmp.ne.s32.totalorder %s2266_s5, %s1909_s12  ;;  %s1914_s23 = sshll.u32 %s2110_s15, 4  ;;  %s1915_s23 = int_to_ptr.vmem [resolvable:$false] %s1914_s23 }
  0x4f   : > { %s1916_s26 = scalar_lea.vmem %s1915_s23, 2048  ;;  %p1917_p2 = scmp.lt.s32.totalorder %s2266_s5, %s1915_s23 }
  0x50   : > { %p1912_p0 = pnand %p1910_p4, %p2246_p8  ;;  %p1918_p13 = scmp.lt.s32.totalorder %s1916_s26, %s1909_s12 }
  0x52   : > { %p1913_p11 = pneg %p1912_p0  ;;  %p1919_p7 = por %p1918_p13, %p1917_p2 }
  0x54   : > { %p1920_p10 = pnand %p1919_p7, %p1913_p11 }
  0x56   : > { %1923 = shalt.err (!%p1920_p10)
}
  0x57   : > { %s2693_s11 = smov 128   ;;  %s2112_s21 = smov 8  }
  0x58   : > { %1788 = dma.hbm_to_vmem [thread:$0]  (!%p2234_p6), %s2318_s2, 1024, %s2266_s5, %s2240_s27, %s2693_s11, %s2693_s11, %s2112_s21  }
  0x59   : > { %s2113_s19 = smov [#allocation7]   ;;  %p2713_p3 = scmp.ne.s32.totalorder %s2712_s25, 0 }
  0x5a   : > { %s375_s18 = sshll.u32 %s2113_s19, 4  ;;  %s1935_s12 = scalar_lea.vmem %s2302_s30, 1536  ;;  %s376_s18 = int_to_ptr.vmem [resolvable:$true] %s375_s18 }
  0x5b   : > { %p1926_p13 = pneg %p2713_p3  ;;  %p1936_p2 = scmp.ne.s32.totalorder %s2302_s30, %s1935_s12 }
  0x5c   : > { %p1943_p10 = scmp.lt.s32.totalorder %s2302_s30, %s2302_s30  ;;  %p1944_p12 = scmp.lt.s32.totalorder %s1935_s12, %s1935_s12 }
  0x5d   : > { %p1938_p4 = pnand %p1936_p2, %p1926_p13 }
  0x5e   : > { %p1945_p1 = por %p1944_p12, %p1943_p10 }
  0x5f   : > { %p1939_p7 = pneg %p1938_p4 }
  0x61   : > { %p1946_p5 = pnand %p1945_p1, %p1939_p7 }
  0x63   : > { %1949 = shalt.err (!%p1946_p5)
}
  0x64   : > { %1775 = dma.hbm_to_vmem [thread:$0]  (!%p2713_p3), %s2668_s3, 1536, %s2302_s30, [#allocation6], %s2693_s11, %s2693_s11, %s2112_s21  }
  0x65   : > { %s1961_s15 = scalar_lea.vmem %s376_s18, 16  ;;  %s1968_s23 = scalar_lea.vmem %s376_s18, 32 }
  0x66   : > { %p1962_p9 = scmp.ne.s32.totalorder %s376_s18, %s1961_s15  ;;  %p1969_p2 = scmp.lt.s32.totalorder %s376_s18, %s376_s18 }
  0x67   : > { %p1970_p4 = scmp.lt.s32.totalorder %s1968_s23, %s1961_s15 }
  0x68   : > { %p1964_p0 = pnand %p1962_p9, %p1926_p13 }
  0x69   : > { %p1971_p7 = por %p1970_p4, %p1969_p2 }
  0x6a   : > { %p1965_p11 = pneg %p1964_p0 }
  0x6c   : > { %p1972_p10 = pnand %p1971_p7, %p1965_p11 }
  0x6e   : > { %1975 = shalt.err (!%p1972_p10)
}
  0x6f   : > { %1778 = dma.hbm_to_vmem [thread:$0]  (!%p2713_p3), %s2671_s6, 16, %s376_s18, [#allocation6]  }
  0x70   : > { %s2114_s30 = smov [#allocation8]   ;;  %s2375_s11 = scalar_lea.hbm %s2675_s10, %s1639_s29 }
  0x71   : > { %s389_s12 = sshll.u32 %s2114_s30, 4  ;;  %s390_s12 = int_to_ptr.vmem [resolvable:$true] %s389_s12 }
  0x72   : > { %s1987_s15 = scalar_lea.vmem %s390_s12, 64  ;;  %p1995_p9 = scmp.lt.s32.totalorder %s390_s12, %s390_s12 }
  0x73   : > { %p1988_p12 = scmp.ne.s32.totalorder %s390_s12, %s1987_s15  ;;  %p1996_p0 = scmp.lt.s32.totalorder %s1987_s15, %s1987_s15 }
  0x75   : > { %p1990_p1 = pnand %p1988_p12, %p1926_p13  ;;  %p1997_p11 = por %p1996_p0, %p1995_p9 }
  0x77   : > { %p1991_p5 = pneg %p1990_p1 }
  0x79   : > { %p1998_p2 = pnand %p1997_p11, %p1991_p5 }
  0x7b   : > { %2001 = shalt.err (!%p1998_p2)
}
  0x7c   : > { %1781 = dma.hbm_to_vmem [thread:$0]  (!%p2713_p3), %s2673_s8, 64, %s390_s12, [#allocation9]  }
  0x7d   : > { %s2002_s29 = scalar_lea.hbm %s2375_s11, 1024  ;;  %s2007_s30 = scalar_lea.hbm %s2675_s10, 2048 }
  0x7e   : > { %p2003_p4 = scmp.ne.s32.totalorder %s2375_s11, %s2002_s29  ;;  %p2008_p10 = scmp.lt.s32.totalorder %s2375_s11, %s2675_s10 }
  0x7f   : > { %p2009_p12 = scmp.lt.s32.totalorder %s2007_s30, %s2002_s29 }
  0x80   : > { %p2005_p13 = pnand %p2003_p4, %p2246_p8 }
  0x81   : > { %p2010_p1 = por %p2009_p12, %p2008_p10 }
  0x82   : > { %p2006_p7 = pneg %p2005_p13 }
  0x84   : > { %p2011_p5 = pnand %p2010_p1, %p2006_p7 }
  0x86   : > { %2014 = shalt.err (!%p2011_p5)
}
  0x87   : > { %s2015_s25 = scalar_lea.vmem %s2269_s28, 1024  ;;  %s2115_s12 = smov [#allocation11]  }
  0x88   : > { %p2016_p3 = scmp.ne.s32.totalorder %s2269_s28, %s2015_s25  ;;  %s2020_s15 = sshll.u32 %s2115_s12, 4  ;;  %s2021_s15 = int_to_ptr.vmem [resolvable:$false] %s2020_s15 }
  0x89   : > { %s2022_s18 = scalar_lea.vmem %s2021_s15, 2048  ;;  %p2023_p11 = scmp.lt.s32.totalorder %s2269_s28, %s2021_s15 }
  0x8a   : > { %p2018_p9 = pnand %p2016_p3, %p2246_p8  ;;  %p2024_p2 = scmp.lt.s32.totalorder %s2022_s18, %s2015_s25 }
  0x8c   : > { %p2019_p0 = pneg %p2018_p9  ;;  %p2025_p4 = por %p2024_p2, %p2023_p11 }
  0x8e   : > { %p2026_p13 = pnand %p2025_p4, %p2019_p0 }
  0x90   : > { %2029 = shalt.err (!%p2026_p13)
}
  0x91   : > { %s2714_s23 = smov 128   ;;  %p2715_p8 = scmp.ne.s32.totalorder %s2711_s16, 0 }
  0x92   : > { %1791 = dma.hbm_to_vmem [thread:$0]  (!%p2234_p6), %s2375_s11, 1024, %s2269_s28, %s2240_s27, %s2714_s23, %s2714_s23, %s2112_s21  }
  0x93   : > { %483 = sbr.rel (%p2715_p8) target bundleno = 1407 (0x57f), region = 68  ;;  %s485_s14 = sand.u32 (!%p2715_p8), 1, %s2272_s13  }
  0x94   : > { %s2413_s29 = sand.u32 (!%p2715_p8), 1, %s2098_s22   ;;  %s486_s20 = scalar_lea.sflag (!%p2715_p8), [#allocation3], %s485_s14 }
  0x95   : > { %s1604_s26 = sshll.u32 (!%p2715_p8), %s2413_s29, 3  ;;  %p2716_p7 = scmp.ne.s32.totalorder (!%p2715_p8), %s2705_s17, 0 }
  0x96   : > { %s489_s19 = scalar_lea.vmem (!%p2715_p8), [#allocation2], %s1604_s26 }
  0x98   : > { %2073 = dma.done.wait (%p2716_p7), %s486_s20, 128  }
  0x99   : > { %2075 = vsyncadd (%p2716_p7), %s486_s20, 4294967168  ;;  %p2717_p6 = scmp.eq.s32.totalorder %s2272_s13, 0 }
  0x9b   : > { %2077 = dma.done.wait (%p2717_p6), [#allocation6], 1552   ;;  %p2718_p10 = pmov %p2717_p6 }
  0x9c   : > { %p2719_p12 = pmov %p2717_p6 }
  0x9d   : > { %2079 = vsyncadd (%p2718_p10), [#allocation6], 4294965744 }
  0x9e   : > { %2081 = dma.done.wait (%p2719_p12), [#allocation9], 64   ;;  %p2720_p1 = pmov %p2717_p6 }
  0x9f   : > { %s1608_s27 = sshll.u32 %s2413_s29, 6 }
  0xa0   : > { %2083 = vsyncadd (%p2720_p1), [#allocation9], 4294967232  ;;  %s2433_s28 = scalar_lea.vmem [#allocation10], %s1608_s27 }
  0xa1   : > { %2085 = dma.done.wait (%p2716_p7), %s486_s20, 2048  }
  0xa2   : > { %2087 = vsyncadd (%p2716_p7), %s486_s20, 4294965248  ;;  %p582_p5 = scmp.lt.s32.totalorder %s2272_s13, 1  ;;  %v2116_v0 = vmov 0.0   ;;  %vm2117_vm0 = vmmov 0   ;;  %v620_v2 = vld [vmem:[#allocation5 + $0x58] sm:$0xff]  ;;  %s2118_s17 = smov 32   ;;  %v712_v39 = vlaneseq }
  0xa3   : > { %1680 = vmatprep.subr.mxu0 %v2116_v0  ;;  %1704 = vmatprep.mubr.msk.f32.mxu0 %vm2117_vm0, %v2116_v0  ;;  %v619_v3 = vld [vmem:[#allocation5 + $0x50] sm:$0xff]  ;;  %v618_v5 = vld [vmem:[#allocation5 + $0x48] sm:$0xff]  ;;  %v617_v6 = vld [vmem:[#allocation5 + $0x40] sm:$0xff]  ;;  %s2119_s5 = smov 64   ;;  %vm605_vm1 = vcmask 261120   ;;  %vm607_vm2 = vcmask 523264  }
  0xa4   : > { %s583_s16 = scalar_select %p582_p5, %s2272_s13, 1  ;;  %1681 = vmatpush3.msra.mxu0 %v620_v2  ;;  %v596_v4 = vld [vmem:[%s489_s19] sm:$0xff]  ;;  %v757_v7 = vld [vmem:[%s2433_s28] sm:$0xff]  ;;  %vm628_vm3 = vcmask 785408   ;;  %v2120_v31 = vmov 0   ;;  %v713_v41 = vshrl.u32 %v712_v39, 7 }
  0xa5   : > { %1682 = vmatprep.subr.mxu0 %v2116_v0  ;;  %v616_v8 = vld [vmem:[#allocation5 + $0x38] sm:$0xff]  ;;  %813 = vrot.lane.b32.xlu1 %v757_v7, %s2118_s17  ;;  %v758_v9 = vld [vmem:[%s2433_s28 + $0x8] sm:$0xff]  ;;  %v613_v13 = vld [vmem:[#allocation5 + $0x20] sm:$0xff]  ;;  %v2121_v37 = vmov 1966171168   ;;  %s519_s23 = scalar_lea.vmem [#allocation11], %s1608_s27 }
  0xa6   : > { %s2444_s11 = sshll.u32 %s583_s16, 3  ;;  %1683 = vmatpush3.msra.mxu0 %v619_v3  ;;  %v615_v10 = vld [vmem:[#allocation5 + $0x30] sm:$0xff]  ;;  %v614_v11 = vld [vmem:[#allocation5 + $0x28] sm:$0xff]  ;;  %v612_v14 = vld [vmem:[#allocation5 + $0x18] sm:$0xff]  ;;  %1848 = vset.pattern.permute.xlu1 %v2120_v31  ;;  %v710_v38 = vunpack.c.l.s4 %v2121_v37  ;;  %v767_v49 = vsub.s32 0, %v713_v41  ;;  %vm1103_vm4 = vcmask 1043456  }
  0xa7   : > { %s589_s2 = scalar_lea.vmem %s2666_s1, %s2444_s11  ;;  %1684 = vmatprep.subr.mxu0 %v2116_v0  ;;  %v759_v12 = vld [vmem:[%s2433_s28 + $0x10] sm:$0xff]  ;;  %v761_v15 = vld [vmem:[%s2433_s28 + $0x20] sm:$0xff]  ;;  %s585_s15 = scalar_lea.vmem %s2665_s0, %s2444_s11  ;;  %v1614_v25 = vld [vmem:[%s2669_s4] ss:$0 sm:$0xff]  ;;  %1849 = vset.pattern.permute.xlu0 %v2120_v31  ;;  %vm1015_vm5 = vcmask 31744  }
  0xa8   : > { %v595_v1 = vld [vmem:[%s589_s2] sm:$0xff]  ;;  %1685 = vmatpush3.msra.mxu0 %v618_v5  ;;  %v610_v17 = vld [vmem:[#allocation5 + $0x8] sm:$0xff]  ;;  %v609_v19 = vld [vmem:[#allocation5] sm:$0xff]  ;;  %v711_v40 = vunpack.c.0.s8 %v710_v38  ;;  %s2723_s2 = sld [smem:[#allocation22_spill]]  ;;  %s1401_s27 = scalar_lea.sflag [#allocation4], %s2413_s29 }
  0xa9   : > { %598 = vrot.lane.b32.xlu0 %v595_v1, %s2118_s17  ;;  %1686 = vmatprep.subr.mxu0 %v2116_v0  ;;  %v611_v16 = vld [vmem:[#allocation5 + $0x10] sm:$0xff]  ;;  %v760_v29 = vld [vmem:[%s2433_s28 + $0x18] sm:$0xff]  ;;  %v705_v33 = vld [vmem:[%s2672_s7 + $0x18] sm:$0xff] }
  0xaa   : > { %1687 = vmatpush3.msra.mxu0 %v617_v6  ;;  %815 = vrot.lane.b32.xlu1 %v758_v9, %s2118_s17  ;;  %v763_v18 = vld [vmem:[%s2433_s28 + $0x30] sm:$0xff]  ;;  %v762_v30 = vld [vmem:[%s2433_s28 + $0x28] sm:$0xff]  ;;  %v764_v32 = vld [vmem:[%s2433_s28 + $0x38] sm:$0xff]  ;;  %v714_v42 = vsub.s32 %v711_v40, %v713_v41  ;;  %s1636_s28 = sshll.u32 %s2272_s13, 7  ;;  %s2123_s13 = smov [#allocation12]  }
  0xab   : > { %1688 = vmatprep.subr.mxu0 %v2116_v0  ;;  %v594_v21 = vld [vmem:[%s585_s15] sm:$0xff]  ;;  %v704_v34 = vld [vmem:[%s2672_s7 + $0x10] sm:$0xff]  ;;  %1707 = vmatprep.subr.mxu1 %v705_v33  ;;  %v703_v35 = vld [vmem:[%s2672_s7 + $0x8] sm:$0xff]  ;;  %s2721_s15 = sld [smem:[#allocation26_spill]] }
  0xac   : > { %1689 = vmatpush3.msra.mxu0 %v616_v8  ;;  %1708 = vmatpush3.msra.mxu1 %v705_v33  ;;  %v702_v36 = vld [vmem:[%s2672_s7] sm:$0xff]  ;;  %v1215_v31 = vld [vmem:[%s519_s23 + $0x18] sm:$0xff] }
  0xad   : > { %602 = vrot.lane.b32.xlu0 %v596_v4, %s2119_s5  ;;  %1690 = vmatprep.subr.mxu0 %v2116_v0  ;;  %v1217_v33 = vld [vmem:[%s519_s23 + $0x28] sm:$0xff] }
  0xae   : > { %1691 = vmatpush3.msra.mxu0 %v615_v10  ;;  %817 = vrot.lane.b32.xlu1 %v759_v12, %s2118_s17  ;;  %p2725_p9 = scmp.ne.s32.totalorder %s2723_s2, 0 }
  0xaf   : > { %1692 = vmatprep.subr.mxu0 %v2116_v0  ;;  %1709 = vmatprep.subr.mxu1 %v704_v34 }
  0xb0   : > { %1693 = vmatpush3.msra.mxu0 %v614_v11  ;;  %1710 = vmatpush3.msra.mxu1 %v704_v34  ;;  %v1218_v34 = vld [vmem:[%s519_s23 + $0x30] sm:$0xff] }
  0xb1   : > { %1694 = vmatprep.subr.mxu0 %v2116_v0  ;;  %1711 = vmatprep.subr.mxu1 %v703_v35  ;;  %s593_s18 = scalar_lea.vmem %s2721_s15, %s2444_s11 }
  0xb2   : > { %1695 = vmatpush3.msra.mxu0 %v613_v13  ;;  %821 = vrot.lane.b32.xlu1 %v761_v15, %s2118_s17 }
  0xb3   : > { %1696 = vmatprep.subr.mxu0 %v2116_v0  ;;  %1712 = vmatpush3.msra.mxu1 %v703_v35  ;;  %v1219_v35 = vld [vmem:[%s519_s23 + $0x38] sm:$0xff] }
  0xb4   : > { %1697 = vmatpush3.msra.mxu0 %v612_v14  ;;  %1713 = vmatprep.subr.mxu1 %v702_v36 }
  0xb5   : > { %1698 = vmatprep.subr.mxu0 %v2116_v0  ;;  %1714 = vmatpush3.msra.mxu1 %v702_v36 }
  0xb6   : > { %1699 = vmatpush3.msra.mxu0 %v611_v16  ;;  %825 = vrot.lane.b32.xlu1 %v763_v18, %s2118_s17 }
  0xb7   : > { %1700 = vmatprep.subr.mxu0 %v2116_v0 }
  0xb8   : > { %1701 = vmatpush3.msra.mxu0 %v610_v17 }
  0xb9   : > { %1702 = vmatprep.subr.mxu0 %v2116_v0 }
  0xba   : > { %1703 = vmatpush3.msra.mxu0 %v609_v19 }
  0xbb   : > { %1741 = vmatprep.subr.mxu0 %v2116_v0 }
 0x117   : > { %v814_v44 = vpop.permute.xlu1 %813 }
 0x11b   : > { %v599_v20 = vpop.permute.xlu0 %598 }
 0x11c   : > { %v606_v22 = vsel %vm605_vm1, %v594_v21, %v599_v20  ;;  %v816_v46 = vpop.permute.xlu1 %815 }
 0x11f   : > { %v603_v23 = vpop.permute.xlu0 %602 }
 0x120   : > { %v608_v24 = vsel %vm607_vm2, %v606_v22, %v603_v23  ;;  %v818_v55 = vpop.permute.xlu1 %817 }
 0x121   : > { %1705 = vmatmul.mubr.msk.f32.vlgmr.msra.gmra.mxu0 %vm628_vm3, %v608_v24 }
 0x122   : > { %1749 = vmatprep.mubr.msk.f32.mxu0 %vm2117_vm0, %v2116_v0 }
 0x124   : > { %v822_v2 = vpop.permute.xlu1 %821 }
 0x128   : > { %v826_v16 = vpop.permute.xlu1 %825 }
 0x1e1   : > { %v698_v26 = vpop.f32.mrf.mxu0 }
 0x1e2   : > { %v699_v27 = vadd.f32 %v1614_v25, %v698_v26 }
 0x1e3   : > { %v1706_v28 = vpop.f32.mrf.mxu0 }
 0x1e4   : > { %845 = vrot.lane.b32.xlu0 %v699_v27, %s2118_s17  ;;  %v715_v43 = vrot.slane %v699_v27, %v714_v42  ;;  %v708_v47 = vcombine.high %v699_v27, %v699_v27  ;;  %v1001_v27 = vld [vmem:[%s593_s18] sm:$0xff]  ;;  %v1212_v28 = vld [vmem:[%s519_s23] sm:$0xff]  ;;  %s2724_s18 = sld [smem:[#allocation27_spill]] }
 0x1e6   : > { %v723_v45 = vcombine.high %v715_v43, %v715_v43  ;;  %v731_v50 = vrot.slane %v715_v43, %v714_v42  ;;  %v722_v51 = vrot.slane %v708_v47, %v714_v42 }
 0x1e8   : > { %819 = vrot.lane.b32.xlu0 %v760_v29, %s2118_s17  ;;  %v745_v48 = vrot.slane %v723_v45, %v714_v42  ;;  %v753_v52 = vcombine.high %v731_v50, %v731_v50  ;;  %v2503_v53 = vrot.slane %v731_v50, %v767_v49  ;;  %v738_v56 = vrot.slane %v722_v51, %v714_v42  ;;  %v1213_v29 = vld [vmem:[%s519_s23 + $0x8] sm:$0xff] }
 0x1e9   : > { %v724_v57 = vcombine.high %v722_v51, %v722_v51 }
 0x1ea   : > { %v2505_v54 = vrot.slane %v745_v48, %v767_v49  ;;  %v2507_v58 = vrot.slane %v753_v52, %v767_v49  ;;  %v837_v59 = vadd.f32 %v814_v44, %v2503_v53  ;;  %v755_v61 = vcombine.high %v745_v48, %v745_v48 }
 0x1eb   : > { %v2511_v3 = vrot.slane %v738_v56, %v767_v49  ;;  %v754_v4 = vcombine.high %v738_v56, %v738_v56  ;;  %v752_v7 = vrot.slane %v724_v57, %v714_v42 }
 0x1ec   : > { %823 = vrot.lane.b32.xlu0 %v762_v30, %s2118_s17  ;;  %v838_v60 = vadd.f32 %v816_v46, %v2505_v54  ;;  %v839_v5 = vadd.f32 %v818_v55, %v2507_v58  ;;  %v2516_v6 = vrot.slane %v755_v61, %v767_v49  ;;  %v1214_v30 = vld [vmem:[%s519_s23 + $0x10] sm:$0xff]  ;;  %v706_v61 = vld [vmem:[#allocation8] sm:$0xf] }
 0x1ed   : > { %v841_v11 = vadd.f32 %v822_v2, %v2511_v3  ;;  %v2520_v12 = vrot.slane %v754_v4, %v767_v49  ;;  %v2523_v14 = vrot.slane %v752_v7, %v767_v49  ;;  %v756_v15 = vcombine.high %v752_v7, %v752_v7  ;;  %1727 = vmatprep.subr.msk.mxu1 %vm1103_vm4, %v706_v61 }
 0x1ef   : > { %v843_v20 = vadd.f32 %v826_v16, %v2520_v12  ;;  %v2529_v22 = vrot.slane %v756_v15, %v767_v49 }
 0x1f0   : > { %827 = vrot.lane.b32.xlu0 %v764_v32, %s2118_s17  ;;  %s2122_s17 = smov 96   ;;  %v1216_v32 = vld [vmem:[%s519_s23 + $0x20] sm:$0xff]  ;;  %s2627_s23 = scalar_lea.hbm %s2724_s18, %s1636_s28 }
 0x256   : > { %v846_v62 = vpop.permute.xlu0 %845 }
 0x257   : > { %v848_v63 = vmul.f32 %v846_v62, %v837_v59  ;;  %v849_v1 = vmul.f32 %v846_v62, %v838_v60  ;;  %v850_v10 = vmul.f32 %v846_v62, %v839_v5  ;;  %v852_v19 = vmul.f32 %v846_v62, %v841_v11 }
 0x258   : > { %v854_v25 = vmul.f32 %v846_v62, %v843_v20 }
 0x259   : > { %864 = vrot.lane.b32.xlu1 %v848_v63, %s2122_s17  ;;  %866 = vrot.lane.b32.xlu0 %v849_v1, %s2122_s17 }
 0x25a   : > { %v820_v8 = vpop.permute.xlu0 %819 }
 0x25b   : > { %v840_v9 = vadd.f32 %v820_v8, %v2516_v6 }
 0x25d   : > { %v851_v13 = vmul.f32 %v846_v62, %v840_v9  ;;  %868 = vrot.lane.b32.xlu1 %v850_v10, %s2122_s17 }
 0x25e   : > { %v824_v17 = vpop.permute.xlu0 %823 }
 0x25f   : > { %v842_v18 = vadd.f32 %v824_v17, %v2523_v14  ;;  %870 = vrot.lane.b32.xlu0 %v851_v13, %s2122_s17 }
 0x261   : > { %v853_v21 = vmul.f32 %v846_v62, %v842_v18  ;;  %872 = vrot.lane.b32.xlu1 %v852_v19, %s2122_s17 }
 0x262   : > { %v828_v23 = vpop.permute.xlu0 %827 }
 0x263   : > { %v844_v24 = vadd.f32 %v828_v23, %v2529_v22  ;;  %874 = vrot.lane.b32.xlu0 %v853_v21, %s2122_s17 }
 0x265   : > { %v855_v26 = vmul.f32 %v846_v62, %v844_v24  ;;  %876 = vrot.lane.b32.xlu1 %v854_v25, %s2122_s17 }
 0x267   : > { %878 = vrot.lane.b32.xlu0 %v855_v26, %s2122_s17  ;;  %s581_s17 = scalar_lea.vmem [#allocation12], %s1604_s26  ;;  %s2034_s26 = sshll.u32 %s2123_s13, 4  ;;  %s2035_s26 = int_to_ptr.vmem [resolvable:$false] %s2034_s26 }
 0x268   : > { %s1414_s25 = sshll.u32 %s581_s17, 4  ;;  %s2036_s14 = scalar_lea.vmem %s2035_s26, 256  ;;  %s1415_s25 = int_to_ptr.vmem [resolvable:$true] %s1414_s25 }
 0x269   : > { %1004 = vperm.xlu1 %1848, %v1001_v27   ;;  %s2030_s11 = scalar_lea.vmem %s1415_s25, 128  ;;  %p2037_p2 = scmp.lt.s32.totalorder %s1415_s25, %s2035_s26 }
 0x26a   : > { %p2031_p3 = scmp.ne.s32.totalorder %s1415_s25, %s2030_s11  ;;  %p2038_p4 = scmp.lt.s32.totalorder %s2036_s14, %s2030_s11 }
 0x26b   : > { %1228 = vrot.lane.b32.xlu0 %v1212_v28, %s2119_s5 }
 0x26c   : > { %p2032_p0 = pnand %p2031_p3, %p2725_p9  ;;  %p2039_p13 = por %p2038_p4, %p2037_p2 }
 0x26d   : > { %1230 = vrot.lane.b32.xlu1 %v1213_v29, %s2119_s5 }
 0x26e   : > { %p2033_p11 = pneg %p2032_p0 }
 0x26f   : > { %1232 = vrot.lane.b32.xlu0 %v1214_v30, %s2119_s5 }
 0x270   : > { %p2040_p8 = pnand %p2039_p13, %p2033_p11 }
 0x271   : > { %1234 = vrot.lane.b32.xlu1 %v1215_v31, %s2119_s5 }
 0x273   : > { %1236 = vrot.lane.b32.xlu0 %v1216_v32, %s2119_s5 }
 0x275   : > { %1238 = vrot.lane.b32.xlu1 %v1217_v33, %s2119_s5 }
 0x277   : > { %1240 = vrot.lane.b32.xlu0 %v1218_v34, %s2119_s5 }
 0x279   : > { %1242 = vrot.lane.b32.xlu1 %v1219_v35, %s2119_s5 }
 0x2cb   : > { %v865_v36 = vpop.permute.xlu1 %864  ;;  %v867_v37 = vpop.permute.xlu0 %866 }
 0x2cc   : > { %1715 = vmatprep.mubr.msk.f32.mxu1 %vm605_vm1, %v865_v36 }
 0x2cd   : > { %1716 = vmatmul.mubr.msk.f32.vlgmr.msra.gmra.mxu1 %vm605_vm1, %v867_v37 }
 0x2ce   : > { %1728 = vmatpush3.msk.msra.mxu1 %vm1103_vm4, %v706_v61 }
 0x2cf   : > { %v869_v38 = vpop.permute.xlu1 %868 }
 0x2d0   : > { %1718 = vmatprep.mubr.msk.f32.mxu1 %vm605_vm1, %v869_v38 }
 0x2d1   : > { %v871_v39 = vpop.permute.xlu0 %870 }
 0x2d2   : > { %1719 = vmatmul.mubr.msk.f32.gmra.mxu1 %vm605_vm1, %v871_v39 }
 0x2d3   : > { %v873_v40 = vpop.permute.xlu1 %872 }
 0x2d4   : > { %1721 = vmatprep.mubr.msk.f32.mxu1 %vm605_vm1, %v873_v40 }
 0x2d5   : > { %v875_v41 = vpop.permute.xlu0 %874 }
 0x2d6   : > { %1722 = vmatmul.mubr.msk.f32.gmra.mxu1 %vm605_vm1, %v875_v41 }
 0x2d7   : > { %v877_v42 = vpop.permute.xlu1 %876 }
 0x2d8   : > { %1724 = vmatprep.mubr.msk.f32.mxu1 %vm605_vm1, %v877_v42 }
 0x2d9   : > { %v879_v43 = vpop.permute.xlu0 %878 }
 0x2da   : > { %1725 = vmatmul.mubr.msk.f32.gmra.mxu1 %vm605_vm1, %v879_v43 }
 0x2dd   : > { %v1229_v44 = vpop.permute.xlu0 %1228 }
 0x2de   : > { %v1252_v45 = vadd.f32 %v1229_v44, %v2503_v53 }
 0x2e0   : > { %1268 = vrot.lane.b32.xlu0 %v1252_v45, %s2119_s5 }
 0x2e1   : > { %v1233_v46 = vpop.permute.xlu0 %1232 }
 0x2e2   : > { %v1254_v47 = vadd.f32 %v1233_v46, %v2507_v58 }
 0x2e4   : > { %v1005_v48 = vpop.permute.xlu1 %1004  ;;  %1272 = vrot.lane.b32.xlu0 %v1254_v47, %s2119_s5 }
 0x2e5   : > { %v1237_v49 = vpop.permute.xlu0 %1236 }
 0x2e6   : > { %v1256_v50 = vadd.f32 %v1237_v49, %v2511_v3 }
 0x2e8   : > { %v1231_v51 = vpop.permute.xlu1 %1230  ;;  %1276 = vrot.lane.b32.xlu0 %v1256_v50, %s2119_s5 }
 0x2e9   : > { %v1253_v52 = vadd.f32 %v1231_v51, %v2505_v54  ;;  %v1241_v55 = vpop.permute.xlu0 %1240 }
 0x2ea   : > { %v1258_v56 = vadd.f32 %v1241_v55, %v2520_v12 }
 0x2eb   : > { %1270 = vrot.lane.b32.xlu1 %v1253_v52, %s2119_s5 }
 0x2ec   : > { %v1235_v53 = vpop.permute.xlu1 %1234  ;;  %1280 = vrot.lane.b32.xlu0 %v1258_v56, %s2119_s5 }
 0x2ed   : > { %v1255_v57 = vadd.f32 %v1235_v53, %v2516_v6 }
 0x2ef   : > { %1274 = vrot.lane.b32.xlu1 %v1255_v57, %s2119_s5 }
 0x2f0   : > { %v1239_v58 = vpop.permute.xlu1 %1238 }
 0x2f1   : > { %v1257_v59 = vadd.f32 %v1239_v58, %v2523_v14 }
 0x2f3   : > { %1278 = vrot.lane.b32.xlu1 %v1257_v59, %s2119_s5 }
 0x2f4   : > { %v1243_v60 = vpop.permute.xlu1 %1242 }
 0x2f5   : > { %v1259_v54 = vadd.f32 %v1243_v60, %v2529_v22 }
 0x2f7   : > { %1282 = vrot.lane.b32.xlu1 %v1259_v54, %s2119_s5  ;;  %s2722_s5 = sld [smem:[#allocation25_spill]] }
 0x38d   : > { %v1717_v62 = vpop.f32.mrf.mxu1 }
 0x38e   : > { %v1008_v8 = vmul.f32 %v1717_v62, %v1005_v48 }
 0x38f   : > { %v962_v63 = vpop.f32.mrf.mxu1 }
 0x390   : > { %v1007_v5 = vmul.f32 %v1005_v48, %v962_v63  ;;  %v1017_v20 = vsel %vm1015_vm5, %v1008_v8, -inf }
 0x392   : > { %v1720_v1 = vpop.f32.mrf.mxu1  ;;  %v1016_v15 = vsel %vm1015_vm5, %v1007_v5, -inf }
 0x393   : > { %v1010_v10 = vmul.f32 %v1720_v1, %v1005_v48 }
 0x394   : > { %v972_v2 = vpop.f32.mrf.mxu1 }
 0x395   : > { %v1009_v11 = vmul.f32 %v1005_v48, %v972_v2  ;;  %v1019_v21 = vsel %vm1015_vm5, %v1010_v10, -inf }
 0x396   : > { %v1723_v3 = vpop.f32.mrf.mxu1 }
 0x397   : > { %v1012_v6 = vmul.f32 %v1723_v3, %v1005_v48  ;;  %v1018_v22 = vsel %vm1015_vm5, %v1009_v11, -inf }
 0x398   : > { %v982_v4 = vpop.f32.mrf.mxu1 }
 0x399   : > { %v1011_v7 = vmul.f32 %v1005_v48, %v982_v4  ;;  %v1022_v16 = vsel %vm1015_vm5, %v1012_v6, -inf }
 0x39a   : > { %v1726_v9 = vpop.f32.mrf.mxu1  ;;  %v1023_v24 = vmax.f32 %v1017_v20, %v1022_v16  ;;  %v1317_v16 = vld [vmem:[%s2722_s5 + $0x10] sm:$0xff]  ;;  %v1271_v20 = vpop.permute.xlu1 %1270 }
 0x39b   : > { %v1020_v12 = vsel %vm1015_vm5, %v1011_v7, -inf  ;;  %v1014_v13 = vmul.f32 %v1726_v9, %v1005_v48 }
 0x39c   : > { %v992_v14 = vpop.f32.mrf.mxu1  ;;  %v1021_v19 = vmax.f32 %v1016_v15, %v1020_v12  ;;  %v1318_v15 = vld [vmem:[%s2722_s5 + $0x18] sm:$0xff] }
 0x39d   : > { %v1026_v17 = vsel %vm1015_vm5, %v1014_v13, -inf  ;;  %v1013_v18 = vmul.f32 %v1005_v48, %v992_v14  ;;  %1742 = vmatpush3.msra.mxu0 %v1318_v15 }
 0x39e   : > { %v1027_v25 = vmax.f32 %v1019_v21, %v1026_v17  ;;  %v1028_v27 = vmax.f32 %v1021_v19, %v1023_v24  ;;  %1743 = vmatprep.subr.mxu0 %v2116_v0  ;;  %v1316_v17 = vld [vmem:[%s2722_s5 + $0x8] sm:$0xff]  ;;  %v1269_v19 = vpop.permute.xlu0 %1268 }
 0x39f   : > { %v1024_v23 = vsel %vm1015_vm5, %v1013_v18, -inf  ;;  %1744 = vmatpush3.msra.mxu0 %v1317_v16 }
 0x3a0   : > { %v1025_v26 = vmax.f32 %v1018_v22, %v1024_v23  ;;  %1745 = vmatprep.subr.mxu0 %v2116_v0  ;;  %v1275_v23 = vpop.permute.xlu1 %1274 }
 0x3a1   : > { %1746 = vmatpush3.msra.mxu0 %v1316_v17 }
 0x3a2   : > { %v1029_v28 = vmax.f32 %v1025_v26, %v1027_v25  ;;  %1747 = vmatprep.subr.mxu0 %v2116_v0  ;;  %v1273_v22 = vpop.permute.xlu0 %1272 }
 0x3a4   : > { %v1030_v29 = vmax.f32 %v1028_v27, %v1029_v28 }
 0x3a6   : > { %v1031_v30 = vsub.f32 %v1007_v5, %v1030_v29  ;;  %v1032_v31 = vsub.f32 %v1008_v8, %v1030_v29  ;;  %v1033_v32 = vsub.f32 %v1009_v11, %v1030_v29  ;;  %v1034_v33 = vsub.f32 %v1010_v10, %v1030_v29 }
 0x3a7   : > { %v1035_v34 = vsub.f32 %v1011_v7, %v1030_v29  ;;  %v1036_v38 = vsub.f32 %v1012_v6, %v1030_v29  ;;  %v1037_v40 = vsub.f32 %v1013_v18, %v1030_v29  ;;  %v1038_v42 = vsub.f32 %v1014_v13, %v1030_v29  ;;  %v1315_v18 = vld [vmem:[%s2722_s5] sm:$0xff] }
 0x3a8   : > { %v1039_v35 = vmul.f32 1.442695, %v1031_v30  ;;  %v1041_v36 = vmul.f32 1.442695, %v1032_v31  ;;  %v1043_v37 = vmul.f32 1.442695, %v1033_v32  ;;  %1748 = vmatpush3.msra.mxu0 %v1315_v18  ;;  %v1277_v30 = vpop.permute.xlu0 %1276 }
 0x3a9   : > { %v1045_v39 = vmul.f32 1.442695, %v1034_v33  ;;  %v1047_v41 = vmul.f32 1.442695, %v1035_v34  ;;  %v1049_v43 = vmul.f32 1.442695, %v1036_v38  ;;  %v1279_v34 = vpop.permute.xlu1 %1278 }
 0x3aa   : > { %1850 = vpow2.f32 %v1039_v35  ;;  %v1051_v44 = vmul.f32 1.442695, %v1037_v40  ;;  %v1053_v45 = vmul.f32 1.442695, %v1038_v42 }
 0x3ab   : > { %1852 = vpow2.f32 %v1041_v36 }
 0x3ac   : > { %1854 = vpow2.f32 %v1043_v37 }
 0x3ad   : > { %1856 = vpow2.f32 %v1045_v39 }
 0x3ae   : > { %1858 = vpow2.f32 %v1047_v41 }
 0x3af   : > { %1860 = vpow2.f32 %v1049_v43 }
 0x3b0   : > { %1862 = vpow2.f32 %v1051_v44  ;;  %v1281_v44 = vpop.permute.xlu0 %1280 }
 0x3b1   : > { %1864 = vpow2.f32 %v1053_v45 }
 0x3b7   : > { %v1851_v46 = vpop.eup %1850 }
 0x3b8   : > { %v1853_v47 = vpop.eup %1852  ;;  %v1055_v48 = vsel %vm1015_vm5, %v1851_v46, 0.0 }
 0x3b9   : > { %v1855_v49 = vpop.eup %1854  ;;  %v1056_v50 = vsel %vm1015_vm5, %v1853_v47, 0.0 }
 0x3ba   : > { %v1857_v51 = vpop.eup %1856  ;;  %v1057_v52 = vadd.f32 %v1056_v50, %v1055_v48  ;;  %v1058_v55 = vsel %vm1015_vm5, %v1855_v49, 0.0 }
 0x3bb   : > { %v1859_v56 = vpop.eup %1858  ;;  %v1060_v57 = vsel %vm1015_vm5, %v1857_v51, 0.0 }
 0x3bc   : > { %v1059_v53 = vadd.f32 %v1058_v55, %v1057_v52  ;;  %v1861_v58 = vpop.eup %1860  ;;  %v1062_v60 = vsel %vm1015_vm5, %v1859_v56, 0.0 }
 0x3bd   : > { %v1863_v54 = vpop.eup %1862  ;;  %v1064_v62 = vsel %vm1015_vm5, %v1861_v58, 0.0 }
 0x3be   : > { %v1061_v59 = vadd.f32 %v1060_v57, %v1059_v53  ;;  %v1865_v63 = vpop.eup %1864  ;;  %v1066_v2 = vsel %vm1015_vm5, %v1863_v54, 0.0 }
 0x3bf   : > { %v1068_v4 = vsel %vm1015_vm5, %v1865_v63, 0.0 }
 0x3c0   : > { %v1063_v61 = vadd.f32 %v1062_v60, %v1061_v59 }
 0x3c2   : > { %v1065_v1 = vadd.f32 %v1064_v62, %v1063_v61 }
 0x3c4   : > { %v1067_v3 = vadd.f32 %v1066_v2, %v1065_v1 }
 0x3c6   : > { %v1069_v5 = vadd.f32 %v1068_v4, %v1067_v3 }
 0x3c8   : > { %1866 = vrcp.f32 %v1069_v5 }
 0x3d5   : > { %v1867_v6 = vpop.eup %1866 }
 0x3d6   : > { %v1071_v7 = vmul.f32 %v1867_v6, %v1851_v46  ;;  %v1072_v8 = vmul.f32 %v1867_v6, %v1853_v47  ;;  %v1073_v9 = vmul.f32 %v1867_v6, %v1855_v49  ;;  %v1074_v10 = vmul.f32 %v1867_v6, %v1857_v51  ;;  %v1283_v46 = vpop.permute.xlu1 %1282 }
 0x3d7   : > { %v1075_v11 = vmul.f32 %v1867_v6, %v1859_v56  ;;  %v1076_v12 = vmul.f32 %v1867_v6, %v1861_v58  ;;  %v1077_v13 = vmul.f32 %v1867_v6, %v1863_v54  ;;  %v1078_v14 = vmul.f32 %v1867_v6, %v1865_v63  ;;  %v1633_v58 = vld [vmem:[#allocation7] ss:$0 sm:$0xff] }
 0x3d8   : > { %1729 = vmatprep.mubr.msk.f32.mxu1 %vm1015_vm5, %v1071_v7 }
 0x3d9   : > { %1730 = vmatmul.mubr.msk.f32.vlgmr.msra.gmra.mxu1 %vm1015_vm5, %v1072_v8 }
 0x3da   : > { %1732 = vmatprep.mubr.msk.f32.mxu1 %vm1015_vm5, %v1073_v9 }
 0x3dd   : > { %1733 = vmatmul.mubr.msk.f32.gmra.mxu1 %vm1015_vm5, %v1074_v10 }
 0x3de   : > { %1735 = vmatprep.mubr.msk.f32.mxu1 %vm1015_vm5, %v1075_v11 }
 0x3e1   : > { %1736 = vmatmul.mubr.msk.f32.gmra.mxu1 %vm1015_vm5, %v1076_v12 }
 0x3e2   : > { %1738 = vmatprep.mubr.msk.f32.mxu1 %vm1015_vm5, %v1077_v13 }
 0x3e5   : > { %1739 = vmatmul.mubr.msk.f32.gmra.mxu1 %vm1015_vm5, %v1078_v14 }
 0x499   : > { %v1731_v21 = vpop.f32.mrf.mxu1 }
 0x49a   : > { %v1293_v25 = vmul.f32 %v1731_v21, %v1271_v20 }
 0x49b   : > { %v1173_v24 = vpop.f32.mrf.mxu1 }
 0x49c   : > { %v1292_v26 = vmul.f32 %v1269_v19, %v1173_v24  ;;  %v1301_v31 = vsel %vm605_vm1, %v1293_v25, 0.0 }
 0x49d   : > { %v1734_v27 = vpop.f32.mrf.mxu1 }
 0x49e   : > { %v1300_v28 = vsel %vm605_vm1, %v1292_v26, 0.0  ;;  %v1295_v32 = vmul.f32 %v1734_v27, %v1275_v23 }
 0x49f   : > { %v1183_v29 = vpop.f32.mrf.mxu1  ;;  %v1302_v0 = vadd.f32 %v1301_v31, %v1300_v28 }
 0x4a0   : > { %v1294_v33 = vmul.f32 %v1273_v22, %v1183_v29  ;;  %v1305_v39 = vsel %vm605_vm1, %v1295_v32, 0.0 }
 0x4a1   : > { %v1737_v35 = vpop.f32.mrf.mxu1 }
 0x4a2   : > { %v1303_v36 = vsel %vm605_vm1, %v1294_v33, 0.0  ;;  %v1297_v40 = vmul.f32 %v1737_v35, %v1279_v34 }
 0x4a3   : > { %v1304_v37 = vadd.f32 %v1303_v36, %v1302_v0  ;;  %v1193_v38 = vpop.f32.mrf.mxu1 }
 0x4a4   : > { %v1296_v41 = vmul.f32 %v1277_v30, %v1193_v38  ;;  %v1309_v49 = vsel %vm605_vm1, %v1297_v40, 0.0 }
 0x4a5   : > { %v1306_v42 = vadd.f32 %v1305_v39, %v1304_v37  ;;  %v1740_v43 = vpop.f32.mrf.mxu1 }
 0x4a6   : > { %v1307_v45 = vsel %vm605_vm1, %v1296_v41, 0.0  ;;  %v1299_v50 = vmul.f32 %v1740_v43, %v1283_v46 }
 0x4a7   : > { %v1308_v47 = vadd.f32 %v1307_v45, %v1306_v42  ;;  %v1203_v48 = vpop.f32.mrf.mxu1 }
 0x4a8   : > { %v1298_v51 = vmul.f32 %v1281_v44, %v1203_v48  ;;  %v1313_v53 = vsel %vm605_vm1, %v1299_v50, 0.0 }
 0x4a9   : > { %v1310_v52 = vadd.f32 %v1309_v49, %v1308_v47 }
 0x4aa   : > { %v1311_v55 = vsel %vm605_vm1, %v1298_v51, 0.0 }
 0x4ab   : > { %v1312_v56 = vadd.f32 %v1311_v55, %v1310_v52 }
 0x4ad   : > { %v1314_v57 = vadd.f32 %v1313_v53, %v1312_v56 }
 0x4af   : > { %1750 = vmatmul.mubr.msk.f32.vlgmr.msra.gmra.mxu0 %vm605_vm1, %v1314_v57 }
 0x56f   : > { %v1395_v59 = vpop.f32.mrf.mxu0 }
 0x570   : > { %v1396_v60 = vadd.f32 %v1633_v58, %v1395_v59 }
 0x571   : > { %v1751_v54 = vpop.f32.mrf.mxu0 }
 0x572   : > { %1399 = vst.msk [vmem:[%s581_s17] sm:$0xff] %vm605_vm1, %v1396_v60 }
 0x573   : > { %2043 = shalt.err (!%p2040_p8)
}
 0x574   : > { %s2044_s20 = scalar_lea.hbm %s2627_s23, 128  ;;  %s2048_s16 = scalar_lea.hbm %s2724_s18, 256 }
 0x575   : > { %p2045_p7 = scmp.ne.s32.totalorder %s2627_s23, %s2044_s20  ;;  %p2049_p12 = scmp.lt.s32.totalorder %s2627_s23, %s2724_s18 }
 0x576   : > { %p2050_p1 = scmp.lt.s32.totalorder %s2048_s16, %s2044_s20 }
 0x577   : > { %p2046_p6 = pnand %p2045_p7, %p2725_p9 }
 0x578   : > { %p2051_p5 = por %p2050_p1, %p2049_p12 }
 0x579   : > { %p2047_p10 = pneg %p2046_p6 }
 0x57b   : > { %p2052_p3 = pnand %p2051_p5, %p2047_p10 }
 0x57d   : > { %2055 = shalt.err (!%p2052_p3)
}
 0x57e   : > { %1770 = dma.vmem_to_hbm [thread:$0]  (%p2725_p9), %s1415_s25, 128, %s2627_s23, %s1401_s27  }
 0x57f PF: > { %s2726_s28 = sld [smem:[#allocation18_spill]]  ;;  %p2729_p11 = scmp.ge.s32.totalorder %s2106_s24, 2 }
 0x580   : > { %s2727_s17 = sld [smem:[#allocation23_spill]] }
 0x585   : > { %s1426_s12 = sand.u32 1, %s2726_s28  }
 0x586   : > { %p2728_p0 = scmp.ne.s32.totalorder %s2727_s17, 0  ;;  %s1427_s15 = scalar_lea.sflag [#allocation4], %s1426_s12 }
 0x588   : > { %p1793_p2 = pnand %p2729_p11, %p2728_p0 }
 0x58a   : > { %p1794_p4 = pneg %p1793_p2 }
 0x58c   : > { %2089 = dma.done.wait (%p1794_p4), %s1427_s15, 128  }
 0x58d   : > { %2091 = vsyncadd (%p1794_p4), %s1427_s15, 4294967168  ;;  %s2730_s24 = sld [smem:[#allocation20_spill]]  ;;  %s2733_s21 = smov %s2098_s22 }
 0x58e   : > { %s2731_s11 = sld [smem:[#allocation19_spill]] }
 0x58f   : > { %s2732_s23 = sld [smem:[#allocation21_spill]] }
 0x593   : > { %p27_p13 = scmp.ge.s32.totalorder %s2730_s24, 4  }
 0x594   : > { %s2734_s22 = smov %s2731_s11 }
 0x595   :  { %29 = sbr.rel (!%p27_p13) target bundleno = 12 (0xc), region = 156 }
 0x59a   :  { %1432 = vsyncpa [#allocation3], 1 }
 0x59b   :  { %1434 = vsyncpa [#allocation3 + $0x1], 1 }
 0x59c   :  { %1435 = vsyncpa [#allocation6], 1 }
 0x59d   :  { %1436 = vsyncpa [#allocation9], 1 }
 0x59e   :  { %1437 = vsyncpa [#allocation4], 1 }
 0x59f   :  { %1439 = vsyncpa [#allocation4 + $0x1], 1 }

</bundles_post_ra>
